<compile_context>
chip_gen: v7x
topology: tpu7x:2x2x1
jax: 0.10.0
libtpu: 0.0.40
codegen_flags: <defaults>
</compile_context>

<pallas_src>
import jax
import jax.numpy as jnp
from jax.experimental import pallas as pl
from jax.experimental.pallas import tpu as pltpu


def _cls_copy_kernel(x_ref, o_ref):
    # Fast path: x_ref is exactly the (tb, H) CLS slab of the selected layer.
    o_ref[...] = x_ref[...]


def _cls_seqwin_kernel(x_ref, o_ref):
    # Fallback path: x_ref is (tb, seq_blk, H); CLS is seq position 0.
    o_ref[...] = x_ref[:, 0, :]


def second_to_last_pooling_v1(hidden_states, layer_index):
    """hidden_states: (L, B, S, H) stacked layers; layer_index: python int.

    Returns (B, H): CLS (seq position 0) embeddings of layer `layer_index + 1`,
    matching the PyTorch module (negative indices follow Python semantics;
    out-of-range indices wrap instead of raising).
    """
    L, B, S, H = hidden_states.shape
    sel = (layer_index + 1) % L  # resolve python-style index at trace time

    itemsize = jnp.dtype(hidden_states.dtype).itemsize
    # Dtype-aware sublane pack: 8 rows (f32), 16 (bf16/f16), 32 (int8/fp8).
    sub = 8 * max(1, 4 // max(itemsize, 1))

    # Batch tile: as big as a modest per-block VMEM budget allows (full B when
    # it fits -> grid of 1 step on 1-TC chips; a few steps for huge B).
    budget_bytes = 4 * 1024 * 1024
    max_tb = max(sub, budget_bytes // max(1, H * itemsize))
    if B <= max_tb:
        tb = B  # full extent is always a legal sublane tile
    else:
        tb = max(sub, (max_tb // sub) * sub)
    grid = (pl.cdiv(B, tb),)

    if H % 128 == 0:
        # Lane-aligned fast path: (L, B, S, H) -> (L, B, S*H) is a free
        # row-major reshape; CLS embedding = first H lanes of each batch row.
        x = hidden_states.reshape(L, B, S * H)
        in_spec = pl.BlockSpec(
            (pl.Squeezed(), tb, H),
            lambda b: (sel, b, 0),  # fixed layer, first H-lane block
        )
        kernel = _cls_copy_kernel
        bytes_accessed = 2 * B * H * itemsize  # 1 read + 1 write, no over-read
    else:
        # Fallback for non-128-multiple H (debug shapes): fetch the minimal
        # legal seq window containing position 0.
        x = hidden_states
        seq_blk = S if S <= sub else sub
        in_spec = pl.BlockSpec(
            (pl.Squeezed(), tb, seq_blk, H),
            lambda b: (sel, b, 0, 0),
        )
        kernel = _cls_seqwin_kernel
        bytes_accessed = (seq_blk + 1) * B * H * itemsize

    return pl.pallas_call(
        kernel,
        out_shape=jax.ShapeDtypeStruct((B, H), hidden_states.dtype),
        grid_spec=pl.GridSpec(
            grid=grid,
            in_specs=[in_spec],
            out_specs=pl.BlockSpec((tb, H), lambda b: (b, 0)),
        ),
        compiler_params=pltpu.CompilerParams(
            dimension_semantics=("parallel",),
        ),
        cost_estimate=pl.CostEstimate(
            flops=0, transcendentals=0, bytes_accessed=bytes_accessed),
    )(x)


if __name__ == "__main__":
    key = jax.random.PRNGKey(0)
    num_layers, batch, seq = 5, 2, 8
    layer_index = -3  # -> selects layer (-3 + 1) = -2, the second-to-last one

    # Exercise both the lane-aligned fast path (H=128) and the fallback (H=32).
    for hidden in (128, 32):
        keys = jax.random.split(jax.random.fold_in(key, hidden), num_layers)
        # Synthetic "outputs['hidden_states']": list of L arrays (B, S, H).
        hidden_states_list = [
            jax.random.normal(k, (batch, seq, hidden), dtype=jnp.float32)
            for k in keys
        ]
        stacked = jnp.stack(hidden_states_list)  # (L, B, S, H)

        out = second_to_last_pooling_v1(stacked, layer_index)
        out = jax.block_until_ready(out)

        # Reference check (plain JAX, mirrors the PyTorch semantics).
        ref = stacked[layer_index + 1, :, 0]
        assert out.shape == (batch, hidden)
        assert jnp.allclose(out, ref), "Pallas output does not match reference"

    print("KERNEL_OK")
</pallas_src>

<mosaic_0001>
module attributes {stable_mosaic.version = 11 : i64} {
  func.func @_cls_copy_kernel(%arg0: i32, %arg1: memref<1x2x128xf32, #tpu.memory_space<vmem>>, %arg2: memref<2x128xf32, #tpu.memory_space<vmem>>) attributes {dimension_semantics = [#tpu.dimension_semantics<parallel>], iteration_bounds = array<i64: 1>, scalar_prefetch = 0 : i64, scratch_operands = 0 : i64, tpu.core_type = #tpu.core_type<tc>, window_params = [{transform_indices = @transform_0, window_bounds = array<i64: 1, 2, 128>}, {transform_indices = @transform_1, window_bounds = array<i64: 2, 128>}]} {
    %c0 = arith.constant 0 : index
    %c0_0 = arith.constant 0 : index
    %c0_1 = arith.constant 0 : index
    %0 = vector.load %arg1[%c0, %c0_0, %c0_1] : memref<1x2x128xf32, #tpu.memory_space<vmem>>, vector<1x2x128xf32>
    %1 = vector.shape_cast %0 : vector<1x2x128xf32> to vector<2x128xf32>
    %c0_2 = arith.constant 0 : index
    %c0_3 = arith.constant 0 : index
    %2 = vector.load %arg2[%c0_2, %c0_3] : memref<2x128xf32, #tpu.memory_space<vmem>>, vector<2x128xf32>
    tpu.vector_store %arg2[%c0_2, %c0_3], %1 {strides = array<i32>} : memref<2x128xf32, #tpu.memory_space<vmem>>, vector<2x128xf32>,
    return
  }
  func.func @transform_0(%arg0: i32) -> (i32, i32, i32) {
    %c3_i32 = arith.constant 3 : i32
    %c0_i32 = arith.constant 0 : i32
    %c0_i32_0 = arith.constant 0 : i32
    return %c3_i32, %arg0, %c0_i32 : i32, i32, i32
  }
  func.func @transform_1(%arg0: i32) -> (i32, i32) {
    %c0_i32 = arith.constant 0 : i32
    %c0_i32_0 = arith.constant 0 : i32
    return %arg0, %c0_i32 : i32, i32
  }
}

</mosaic_0001>

<bundles_post_ra>
// kernel: tpu_custom_call.1
= control target key start
LH: loop header
LB: loop body
LE: loop exit
PB: predicated region body
PF: predicated region fallthrough
CT: control target
= control target key end

     0   :  { %6 = vsyncpa [#allocation3], 0  ;;  %s128_s0 = inlined_call_operand.hbm [shape: f32[5,2,1024], index: 0, kind: input, shape index: {}]   ;;  %s129_s1 = inlined_call_operand.hbm [shape: f32[2,128], index: 1, kind: output, shape index: {}]  }
   0x1   :  { %7 = vsyncpa [#allocation4], 0  ;;  %s13_s8 = scalar_lea.hbm %s128_s0, 768  ;;  %s92_s9 = smov [#allocation2]  }
   0x2   :  { %s15_s10 = sshll.u32 %s92_s9, 4  ;;  %s65_s13 = scalar_lea.hbm %s128_s0, 800  ;;  %s16_s10 = int_to_ptr.vmem [resolvable:$true] %s15_s10 }
   0x3   :  { %p42_p0 = scmp.ne.s32.totalorder %s13_s8, %s65_s13  ;;  %s43_s16 = scalar_lea.hbm %s128_s0, 1280 }
   0x4   :  { %p44_p1 = scmp.lt.u32.totalorder %s13_s8, %s128_s0  ;;  %p45_p2 = scmp.lt.u32.totalorder %s43_s16, %s65_s13 }
   0x5   :  { %p47_p4 = scmp.lt.u32.totalorder %s65_s13, %s13_s8 }
   0x6   :  { %p46_p3 = por %p45_p2, %p44_p1 }
   0x8   :  { %p48_p5 = por %p47_p4, %p46_p3 }
   0xa   :  { %p49_p6 = pnand %p48_p5, %p42_p0 }
   0xc   :  { %52 = shalt.err (!%p49_p6)
}
   0xd   :  { %s53_s19 = scalar_lea.vmem %s16_s10, 32  ;;  %p58_p8 = scmp.lt.s32.totalorder %s16_s10, %s16_s10 }
   0xe   :  { %p54_p7 = scmp.ne.s32.totalorder %s16_s10, %s53_s19  ;;  %p59_p9 = scmp.lt.s32.totalorder %s53_s19, %s53_s19 }
  0x10   :  { %p60_p10 = por %p59_p9, %p58_p8 }
  0x12   :  { %p61_p11 = pnand %p60_p10, %p54_p7 }
  0x14   :  { %64 = shalt.err (!%p61_p11)
}
  0x15   :  { %18 = dma.hbm_to_vmem [thread:$0]  %s13_s8, 32, %s16_s10, [#allocation3]  }
  0x16   :  { %88 = dma.done.wait [#allocation3], 32  }
  0x17   :  { %89 = vsyncadd [#allocation3], 4294967264  ;;  %s93_s20 = smov [#allocation5]   ;;  %v22_v0 = vld [vmem:[#allocation2] sm:$0x3] }
  0x18   :  { %s30_s21 = sshll.u32 %s93_s20, 4  ;;  %23 = vst [vmem:[#allocation5] sm:$0x3] %v22_v0  ;;  %s31_s21 = int_to_ptr.vmem [resolvable:$true] %s30_s21 }
  0x19   :  { %s66_s0 = scalar_lea.vmem %s31_s21, 32  ;;  %p71_p13 = scmp.lt.s32.totalorder %s31_s21, %s31_s21 }
  0x1a   :  { %p67_p12 = scmp.ne.s32.totalorder %s31_s21, %s66_s0  ;;  %p72_p0 = scmp.lt.s32.totalorder %s66_s0, %s66_s0 }
  0x1c   :  { %p73_p1 = por %p72_p0, %p71_p13 }
  0x1e   :  { %p74_p2 = pnand %p73_p1, %p67_p12 }
  0x20   :  { %77 = shalt.err (!%p74_p2)
}
  0x21   :  { %s78_s24 = scalar_lea.hbm %s129_s1, 32 }
  0x22   :  { %p79_p3 = scmp.ne.s32.totalorder %s129_s1, %s78_s24  ;;  %p82_p4 = scmp.lt.u32.totalorder %s78_s24, %s129_s1 }
  0x24   :  { %p84_p5 = pnand %p82_p4, %p79_p3 }
  0x26   :  { %87 = shalt.err (!%p84_p5)
}
  0x27   :  { %33 = dma.vmem_to_hbm [thread:$0]  %s31_s21, 32, %s129_s1, [#allocation4]  }
  0x28   :  { %90 = dma.done.wait [#allocation4], 32  }
  0x29   :  { %91 = vsyncadd [#allocation4], 4294967264 }
  0x2a   :  { %37 = vsyncpa [#allocation3], 1 }
  0x2b   :  { %38 = vsyncpa [#allocation4], 1 }

</bundles_post_ra>
